<compile_context>
chip_gen: v7x
topology: tpu7x:2x2x1
jax: 0.10.0
libtpu: 0.0.40
codegen_flags: <defaults>
</compile_context>

<pallas_src>
import functools

import jax
import jax.numpy as jnp
import numpy as np
from jax.experimental import pallas as pl
from jax.experimental.pallas import tpu as pltpu

_LANE = 128


def _round_up(v, m):
    return (v + m - 1) // m * m


def _sublane_multiple(dtype):
    # f32 -> 8 sublanes per vreg, bf16 -> 16 (packed), int8/fp8 -> 32.
    return max(8, 32 // jnp.dtype(dtype).itemsize)


def _pow_static_int(x, n):
    """x ** n for a static positive integer n via repeated multiplies (VPU only)."""
    acc, base = None, x
    while n:
        if n & 1:
            acc = base if acc is None else acc * base
        n >>= 1
        if n:
            base = base * base
    return acc


def _apply_power(x, p_scalar, static_p, use_bf16):
    """Strictly positive f32 x (post eps-clamp) -> x ** p as f32."""
    if static_p is not None:
        sp = float(static_p)
        if sp == 1.0:
            return x
        if sp.is_integer() and 2.0 <= sp <= 16.0:
            return _pow_static_int(x, int(sp))          # no EUP work at all
        if use_bf16:
            return jnp.exp(sp * jnp.log(x.astype(jnp.bfloat16))).astype(jnp.float32)
        return jnp.exp(sp * jnp.log(x))
    if use_bf16:
        # bf16 log/exp on the EUP (v6e/v7x only); row sums stay f32.
        return jnp.exp(p_scalar.astype(jnp.bfloat16)
                       * jnp.log(x.astype(jnp.bfloat16))).astype(jnp.float32)
    return jnp.exp(p_scalar * jnp.log(x))               # traced (learnable) exponent


def _apply_root(mean, p_scalar, static_p):
    """mean ** (1/p) for strictly positive mean (per-row only, tiny cost)."""
    inv_p = (1.0 / float(static_p)) if static_p is not None else (1.0 / p_scalar)
    return jnp.exp(jnp.log(mean) * inv_p)


def _gem_fused_kernel(p_ref, x_ref, *rest, eps, hw, k, static_p, use_bf16):
    """Whole (folded) spatial extent in one block; 1-D grid over row tiles."""
    if k > 1:
        sel_ref, o_ref = rest
    else:
        (o_ref,) = rest
    p = p_ref[0] if static_p is None else None
    x = jnp.maximum(x_ref[...].astype(jnp.float32), eps)   # clamp(min=eps) -> > 0
    xp = _apply_power(x, p, static_p, use_bf16)
    if k > 1:
        # Segmented spatial sum over the k row-segments folded into the lane
        # axis: one matmul against a constant 0/1 selector on the idle MXU.
        s = jnp.dot(xp, sel_ref[...], preferred_element_type=jnp.float32)
    else:
        s = jnp.sum(xp, axis=-1, keepdims=True)
    mean = s * (1.0 / hw)                                   # avg_pool2d over (H, W)
    o_ref[...] = _apply_root(mean, p, static_p).astype(o_ref.dtype)


def _gem_chunked_kernel(p_ref, x_ref, o_ref, acc_ref, *, eps, hw, ts, static_p, use_bf16):
    """Very large H*W: 2-D grid, spatial (reduction) axis last, resident accumulator."""
    j = pl.program_id(1)

    @pl.when(j == 0)
    def _():
        acc_ref[...] = jnp.zeros_like(acc_ref)

    p = p_ref[0] if static_p is None else None
    x = jnp.maximum(x_ref[...].astype(jnp.float32), eps)
    xp = _apply_power(x, p, static_p, use_bf16)
    if hw % ts != 0:
        # Zero OOB lanes (only the last chunk can read past H*W); divisor below
        # is the true H*W. Masking *after* the power keeps log() off garbage.
        col = jax.lax.broadcasted_iota(jnp.int32, xp.shape, 1) + j * ts
        xp = jnp.where(col < hw, xp, 0.0)
    # TODO(synk): for very large H*W a (TM, 128) VPU accumulator with a single
    # finalize-time XLU reduce would shave the per-chunk cross-lane reduce.
    acc_ref[...] += jnp.sum(xp, axis=-1, keepdims=True)

    @pl.when(j == pl.num_programs(1) - 1)
    def _():
        mean = acc_ref[...] * (1.0 / hw)
        o_ref[...] = _apply_root(mean, p, static_p).astype(o_ref.dtype)


def _plan_fused(rows, hw, in_item, out_item, sub, cap_bytes, max_fold_lanes=1024):
    """Pick (fold k, folded rows, folded lane extent L, row tile tm)."""
    # Fold k consecutive (B*C) rows into the lane axis when hw % 128 != 0
    # (e.g. 7x7=49 would leave vregs at 38% occupancy); k must divide rows.
    k = 1
    if hw % _LANE != 0:
        best = hw / _round_up(hw, _LANE)
        for cand in range(2, min(rows, max(1, max_fold_lanes // hw)) + 1):
            if rows % cand:
                continue
            occ = (cand * hw) / _round_up(cand * hw, _LANE)
            if occ > best + 1e-9:
                best, k = occ, cand
    rows2, L = rows // k, k * hw
    lpad = _round_up(L, _LANE)
    # Padded VMEM working set: double-buffered x + out blocks (+ f32 selector).
    sel_bytes = 2 * _round_up(L, 8) * _LANE * 4 if k > 1 else 0
    per_row = 2 * lpad * in_item + 2 * _LANE * out_item
    tm = max(sub, (cap_bytes - sel_bytes) // per_row // sub * sub)
    tm = min(tm, _round_up(rows2, sub))
    # Give grid axis 0 at least two steps so both v7x TensorCores get work.
    if -(-rows2 // tm) < 2 and rows2 >= 2 * sub:
        tm = _round_up(-(-rows2 // 2), sub)
    if rows2 < sub:
        tm = rows2                      # block equals full dim -> no padded rows
    return k, rows2, L, tm


def _plan_chunked(rows, hw, in_item, out_item, sub, cap_bytes):
    tm = min(_round_up(rows, sub), 256)
    if -(-rows // tm) < 2 and rows >= 2 * sub:
        tm = _round_up(-(-rows // 2), sub)
    if rows < sub:
        tm = rows
    fixed = 2 * tm * _LANE * out_item + tm * _LANE * 4      # out double-buf + f32 scratch
    ts = (cap_bytes - fixed) // (2 * tm * in_item) // _LANE * _LANE
    ts = max(_LANE, min(ts, _round_up(hw, _LANE)))
    return tm, ts


def gem_pallas(x, p, eps=1e-6, *, static_p=None, use_bf16_transcendentals=False,
               vmem_working_set_bytes=10 * 1024 * 1024):
    """GeM pooling. x: (B, C, H, W), p: (1,) learnable exponent -> (B, C, 1, 1).

    static_p: optional trace-time value of p (e.g. 3, the module default). When
      given, x**p uses repeated multiplies instead of exp(p*log(x)), removing
      the per-element EUP transcendentals (the v7x bottleneck); the runtime p
      array is ignored on that path.
    use_bf16_transcendentals: bf16 log/exp for a learnable p — worthwhile on
      v7x (EUP-bound), ~neutral on v6e, do NOT enable on v5e (no bf16 EUP).
    """
    B, C, H, W = x.shape
    rows, hw = B * C, H * W
    in_item = out_item = x.dtype.itemsize
    sub = _sublane_multiple(x.dtype)
    cap = int(vmem_working_set_bytes)
    p32 = jnp.asarray(p, jnp.float32).reshape(1)

    n = rows * hw
    is_int_p = (static_p is not None and float(static_p).is_integer()
                and 1.0 <= float(static_p) <= 16.0)
    cost = pl.CostEstimate(
        flops=6 * n,
        transcendentals=(0 if is_int_p else 2 * n) + 2 * rows,
        bytes_accessed=(n + rows) * in_item)
    cparams_kwargs = dict(vmem_limit_bytes=32 * 1024 * 1024)

    # Fused path feasibility: the smallest legal row tile with the whole
    # (unfolded) spatial extent in one block must fit the padded-VMEM budget.
    fused_ok = sub * (2 * _round_up(hw, _LANE) * in_item + 2 * _LANE * out_item) <= cap

    if fused_ok:
        k, rows2, L, tm = _plan_fused(rows, hw, in_item, out_item, sub, cap)
        x3 = x.reshape(rows2, L)                             # pure metadata reshape
        in_specs = [
            pl.BlockSpec(memory_space=pltpu.MemorySpace.SMEM),   # p (scalar parameter)
            pl.BlockSpec((tm, L), lambda i: (i, 0)),             # x tile, full folded extent
        ]
        args = [p32, x3]
        if k > 1:
            sel = np.zeros((L, k), np.float32)
            sel[np.arange(L), np.arange(L) // hw] = 1.0          # segment selector
            in_specs.append(pl.BlockSpec((L, k), lambda i: (0, 0)))  # resident across grid
            args.append(jnp.asarray(sel))
        out = pl.pallas_call(
            functools.partial(_gem_fused_kernel, eps=float(eps), hw=hw, k=k,
                              static_p=static_p, use_bf16=use_bf16_transcendentals),
            out_shape=jax.ShapeDtypeStruct((rows2, k), x.dtype),
            grid=(pl.cdiv(rows2, tm),),
            in_specs=in_specs,
            out_specs=pl.BlockSpec((tm, k), lambda i: (i, 0)),
            compiler_params=pltpu.CompilerParams(
                dimension_semantics=("parallel",), **cparams_kwargs),
            cost_estimate=cost,
        )(*args)
    else:
        # Very large feature maps: chunk the spatial (reduction) axis, keep it
        # as the LAST grid axis with a resident (TM, 1) f32 accumulator.
        tm, ts = _plan_chunked(rows, hw, in_item, out_item, sub, cap)
        x2 = x.reshape(rows, hw)
        out = pl.pallas_call(
            functools.partial(_gem_chunked_kernel, eps=float(eps), hw=hw, ts=ts,
                              static_p=static_p, use_bf16=use_bf16_transcendentals),
            out_shape=jax.ShapeDtypeStruct((rows, 1), x.dtype),
            grid=(pl.cdiv(rows, tm), pl.cdiv(hw, ts)),
            in_specs=[
                pl.BlockSpec(memory_space=pltpu.MemorySpace.SMEM),
                pl.BlockSpec((tm, ts), lambda i, j: (i, j)),
            ],
            out_specs=pl.BlockSpec((tm, 1), lambda i, j: (i, 0)),
            scratch_shapes=[pltpu.VMEM((tm, 1), jnp.float32)],
            compiler_params=pltpu.CompilerParams(
                dimension_semantics=("parallel", "arbitrary"), **cparams_kwargs),
            cost_estimate=cost,
        )(p32, x2)

    return out.reshape(B, C, 1, 1)


def gem_reference(x, p, eps=1e-6):
    """Pure-JAX reference mirroring the PyTorch forward."""
    xc = jnp.maximum(x, eps)                  # clamp(min=eps)
    xp = xc ** p[0]
    pooled = jnp.mean(xp, axis=(-2, -1), keepdims=True)
    return pooled ** (1.0 / p[0])


if __name__ == "__main__":
    key = jax.random.PRNGKey(0)
    k1, k2 = jax.random.split(key)
    eps = 1e-6
    p = jnp.ones((1,), dtype=jnp.float32) * 3.0   # nn.Parameter(torch.ones(1) * 3)

    # Small module-consistent shape (H*W is a multiple of 128).
    x1 = jax.random.normal(k1, (2, 4, 16, 16), dtype=jnp.float32)
    # Typical backbone output (7x7): exercises the row-folding + MXU segmented reduce.
    x2 = jax.random.normal(k2, (2, 8, 7, 7), dtype=jnp.float32)

    out1 = gem_pallas(x1, p, eps)                        # learnable-p (traced exponent) path
    out1_static = gem_pallas(x1, p, eps, static_p=3)     # static-p fast path (x*x*x)
    out2 = gem_pallas(x2, p, eps)
    out2_static = gem_pallas(x2, p, eps, static_p=3)
    jax.block_until_ready((out1, out1_static, out2, out2_static))

    ref1 = gem_reference(x1, p, eps)
    ref2 = gem_reference(x2, p, eps)
    assert out1.shape == (2, 4, 1, 1) and out2.shape == (2, 8, 1, 1)
    for got, ref in ((out1, ref1), (out1_static, ref1), (out2, ref2), (out2_static, ref2)):
        err = float(jnp.max(jnp.abs(got - ref)))
        assert jnp.allclose(got, ref, atol=1e-5, rtol=1e-5), f"mismatch: max abs err {err}"

    print("KERNEL_OK")
</pallas_src>

<mosaic_0001>
module attributes {stable_mosaic.version = 11 : i64} {
  func.func @_gem_fused_kernel(%arg0: i32, %arg1: memref<1xf32, #tpu.memory_space<smem>>, %arg2: memref<8x256xf32, #tpu.memory_space<vmem>>, %arg3: memref<8x1xf32, #tpu.memory_space<vmem>>) attributes {dimension_semantics = [#tpu.dimension_semantics<parallel>], iteration_bounds = array<i64: 1>, scalar_prefetch = 0 : i64, scratch_operands = 0 : i64, tpu.core_type = #tpu.core_type<tc>, window_params = [{transform_indices = @transform_0, window_bounds = array<i64: 1>}, {transform_indices = @transform_1, window_bounds = array<i64: 8, 256>}, {transform_indices = @transform_2, window_bounds = array<i64: 8, 1>}]} {
    %c0 = arith.constant 0 : index
    %0 = memref.load %arg1[%c0] : memref<1xf32, #tpu.memory_space<smem>>
    %c0_0 = arith.constant 0 : index
    %c0_1 = arith.constant 0 : index
    %1 = vector.load %arg2[%c0_0, %c0_1] : memref<8x256xf32, #tpu.memory_space<vmem>>, vector<8x256xf32>
    %cst = arith.constant 9.99999997E-7 : f32
    %2 = vector.broadcast %cst : f32 to vector<8x256xf32>
    %3 = arith.maximumf %1, %2 : vector<8x256xf32>
    %4 = math.log %3 : vector<8x256xf32>
    %5 = vector.broadcast %0 : f32 to vector<8x256xf32>
    %6 = arith.mulf %5, %4 : vector<8x256xf32>
    %7 = math.exp %6 : vector<8x256xf32>
    %cst_2 = arith.constant dense<0.000000e+00> : vector<8xf32>
    %8 = vector.multi_reduction <add>, %7, %cst_2 [1] : vector<8x256xf32> to vector<8xf32>
    %9 = vector.shape_cast %8 : vector<8xf32> to vector<8x1xf32>
    %cst_3 = arith.constant 3.906250e-03 : f32
    %10 = vector.broadcast %cst_3 : f32 to vector<8x1xf32>
    %11 = arith.mulf %9, %10 : vector<8x1xf32>
    %cst_4 = arith.constant 1.000000e+00 : f32
    %12 = arith.divf %cst_4, %0 : f32
    %13 = math.log %11 : vector<8x1xf32>
    %14 = vector.broadcast %12 : f32 to vector<8x1xf32>
    %15 = arith.mulf %13, %14 : vector<8x1xf32>
    %16 = math.exp %15 : vector<8x1xf32>
    %c0_5 = arith.constant 0 : index
    %c0_6 = arith.constant 0 : index
    %17 = vector.load %arg3[%c0_5, %c0_6] : memref<8x1xf32, #tpu.memory_space<vmem>>, vector<8x1xf32>
    tpu.vector_store %arg3[%c0_5, %c0_6], %16 {strides = array<i32>} : memref<8x1xf32, #tpu.memory_space<vmem>>, vector<8x1xf32>,
    return
  }
  func.func @transform_0(%arg0: i32) -> i32 {
    %c0_i32 = arith.constant 0 : i32
    %c0_i32_0 = arith.constant 0 : i32
    return %c0_i32 : i32
  }
  func.func @transform_1(%arg0: i32) -> (i32, i32) {
    %c0_i32 = arith.constant 0 : i32
    %c0_i32_0 = arith.constant 0 : i32
    return %arg0, %c0_i32 : i32, i32
  }
  func.func @transform_2(%arg0: i32) -> (i32, i32) {
    %c0_i32 = arith.constant 0 : i32
    %c0_i32_0 = arith.constant 0 : i32
    return %arg0, %c0_i32 : i32, i32
  }
}

</mosaic_0001>

<bundles_post_ra>
// kernel: tpu_custom_call.1
= control target key start
LH: loop header
LB: loop body
LE: loop exit
PB: predicated region body
PF: predicated region fallthrough
CT: control target
= control target key end

     0   :  { %8 = vsyncpa [#allocation4], 0  ;;  %s101_s9 = smov [#allocation3]   ;;  %s135_s0 = inlined_call_operand.<no memory space> [shape: f32[1], index: 0, kind: input, shape index: {}]   ;;  %s136_s1 = inlined_call_operand.hbm [shape: f32[8,256], index: 1, kind: input, shape index: {}]   ;;  %s137_s2 = inlined_call_operand.vmem [shape: f32[8,1], index: 2, kind: output, shape index: {}]  }
   0x1   :  { %s17_s10 = sshll.u32 %s101_s9, 4  ;;  %s77_s13 = scalar_lea.hbm %s136_s1, 256  ;;  %s18_s10 = int_to_ptr.vmem [resolvable:$true] %s17_s10 }
   0x2   :  { %p78_p0 = scmp.ne.s32.totalorder %s136_s1, %s77_s13  ;;  %p81_p1 = scmp.lt.u32.totalorder %s77_s13, %s136_s1 }
   0x4   :  { %p83_p2 = pnand %p81_p1, %p78_p0 }
   0x6   :  { %86 = shalt.err (!%p83_p2)
}
   0x7   :  { %s87_s18 = scalar_lea.vmem %s18_s10, 256  ;;  %p92_p4 = scmp.lt.s32.totalorder %s18_s10, %s18_s10 }
   0x8   :  { %p88_p3 = scmp.ne.s32.totalorder %s18_s10, %s87_s18  ;;  %p93_p5 = scmp.lt.s32.totalorder %s87_s18, %s87_s18 }
   0xa   :  { %p94_p6 = por %p93_p5, %p92_p4 }
   0xc   :  { %p95_p7 = pnand %p94_p6, %p88_p3 }
   0xe   :  { %98 = shalt.err (!%p95_p7)
}
   0xf   :  { %20 = dma.hbm_to_vmem [thread:$0]  %s136_s1, 256, %s18_s10, [#allocation4]  }
  0x10   :  { %99 = dma.done.wait [#allocation4], 256  }
  0x11   :  { %100 = vsyncadd [#allocation4], 4294967040  ;;  %v33_v0 = vstv %s135_s0  ;;  %v25_v1 = vld [vmem:[#allocation3] sm:$0xff]  ;;  %v26_v2 = vld [vmem:[#allocation3 + $0x8] sm:$0xff]  ;;  %vm53_vm0 = vcmask 7168  }
  0x12   :  { %63 = vrcp.f32 %v33_v0  ;;  %v27_v3 = vmax.f32 %v25_v1, 1e-06  ;;  %v28_v4 = vmax.f32 %v26_v2, 1e-06 }
  0x14   :  { %65 = vlog2.f32 %v27_v3 }
  0x15   :  { %67 = vlog2.f32 %v28_v4 }
  0x1c   :  { %v64_v5 = vpop.eup %63 }
  0x1d   :  { %60 = vpush %v64_v5 }
  0x1e   :  { %v66_v6 = vpop.eup %65 }
  0x1f   :  { %v68_v7 = vpop.eup %67  ;;  %v30_v8 = vmul.f32 0.6931472, %v66_v6 }
  0x20   :  { %v32_v9 = vmul.f32 0.6931472, %v68_v7 }
  0x21   :  { %v34_v10 = vmul.f32 %v33_v0, %v30_v8 }
  0x22   :  { %v35_v11 = vmul.f32 %v33_v0, %v32_v9 }
  0x23   :  { %v36_v12 = vmul.f32 1.442695, %v34_v10 }
  0x24   :  { %v38_v13 = vmul.f32 1.442695, %v35_v11 }
  0x25   :  { %69 = vpow2.f32 %v36_v12 }
  0x26   :  { %71 = vpow2.f32 %v38_v13 }
  0x2f   :  { %v70_v14 = vpop.eup %69 }
  0x30   :  { %v72_v15 = vpop.eup %71 }
  0x31   :  { %v40_v16 = vadd.f32 %v72_v15, %v70_v14 }
  0x33   :  { %41 = vadd.xlane.f32.xlu0 %v40_v16 }
  0x4e   :  { %s61_s0 = spop %60 }
  0x4f   :  { %v49_v20 = vstv %s61_s0 }
  0xc0   :  { %v42_v17 = vpop.xlane.xlu0 %41 }
  0xc1   :  { %v43_v18 = vmul.f32 0.00390625, %v42_v17 }
  0xc3   :  { %73 = vlog2.f32 %v43_v18 }
  0xcd   :  { %v74_v19 = vpop.eup %73 }
  0xce   :  { %v48_v21 = vmul.f32 0.6931472, %v74_v19 }
  0xd0   :  { %v50_v22 = vmul.f32 %v49_v20, %v48_v21 }
  0xd2   :  { %v51_v23 = vmul.f32 1.442695, %v50_v22 }
  0xd4   :  { %75 = vpow2.f32 %v51_v23 }
  0xde   :  { %v76_v24 = vpop.eup %75 }
  0xdf   :  { %54 = vst.msk [vmem:[%s137_s2] sm:$0xff] %vm53_vm0, %v76_v24 }
  0xe0   :  { %59 = vsyncpa [#allocation4], 1 }

</bundles_post_ra>
